<compile_context>
chip_gen: v7x
topology: tpu7x:2x2x1
jax: 0.10.0
libtpu: 0.0.40
codegen_flags: <defaults>
</compile_context>

<pallas_src>
import functools

import jax
import jax.numpy as jnp
from jax.experimental import pallas as pl
from jax.experimental.pallas import tpu as pltpu

_MiB = 1024 * 1024


def _round_up(x, m):
    return (x + m - 1) // m * m


def _cdiv(a, b):
    return -(-a // b)


def _vmem_capacity_bytes():
    """Physical VMEM of the current TPU generation (conservative fallback)."""
    try:
        info = pltpu.get_tpu_info()
        cap = getattr(info, "vmem_capacity_bytes", None)
        if cap:
            return int(cap)
    except Exception:
        pass
    return 64 * _MiB  # v7x per-TensorCore VMEM (smallest of the targets)


# ----------------------------------------------------------------------------
# Kernels
# ----------------------------------------------------------------------------
def _fused_kernel(x_ref, w_ref, b_ref, o_ref, *, compute_dtype):
    # x_ref: (tm, H) original dtype; w_ref: (H, tn) compute dtype; b: (1, tn) f32.
    x = x_ref[...].astype(compute_dtype)          # in-kernel cast (free on VPU)
    acc = jnp.dot(x, w_ref[...], preferred_element_type=jnp.float32)
    o_ref[...] = (acc + b_ref[...]).astype(o_ref.dtype)


def _fused_kernel_acc(x_ref, w_ref, b_ref, o_ref, acc_ref, *, compute_dtype):
    # Same GEMM with an H-reduction grid axis (axis 2, "arbitrary").
    k = pl.program_id(2)

    @pl.when(k == 0)
    def _():
        acc_ref[...] = jnp.zeros_like(acc_ref)

    acc_ref[...] += jnp.dot(x_ref[...].astype(compute_dtype), w_ref[...],
                            preferred_element_type=jnp.float32)

    @pl.when(k == pl.num_programs(2) - 1)
    def _():
        o_ref[...] = (acc_ref[...] + b_ref[...]).astype(o_ref.dtype)


# ----------------------------------------------------------------------------
# One-time weight preparation (hoist / cache this; do NOT run it per call)
# ----------------------------------------------------------------------------
def prepare_ensemble_params(stacked_w, stacked_b, compute_dtype=jnp.bfloat16):
    """stacked_w: (K, H, D), stacked_b: (K, D) ->
    (w_fused: (H, N_pad) compute_dtype, b_fused: (1, N_pad) f32, N = K*D).

    torch.cat of member outputs along dim=1 == one GEMM against the
    horizontally concatenated member weights; N is zero-padded to a multiple
    of 128 so every output store is an unmasked lane-dense vst (this also
    covers out_dim == 1 "scalar" members: they are single columns here).
    """
    K, H, D = stacked_w.shape
    N = K * D
    N_pad = _round_up(N, 128)
    w = jnp.transpose(stacked_w, (1, 0, 2)).reshape(H, N)
    b = stacked_b.reshape(1, N)
    if N_pad != N:
        w = jnp.pad(w, ((0, 0), (0, N_pad - N)))
        b = jnp.pad(b, ((0, 0), (0, N_pad - N)))
    return w.astype(compute_dtype), b.astype(jnp.float32), N


# ----------------------------------------------------------------------------
# Tiling planner
# ----------------------------------------------------------------------------
def _plan_tiles(B, H, N_pad, x_itemsize, w_itemsize, out_itemsize, vmem_cap):
    budget = min(vmem_cap // 2, 80 * _MiB)
    tm_cap = 512 if vmem_cap > 80 * _MiB else 256   # v5e/v6e vs v7x caps

    def ws_bytes(tm, tk, tn, with_acc):
        # double-buffered input/output blocks (+ f32 accumulator if tiling H)
        ws = 2 * (tm * tk * x_itemsize + tk * tn * w_itemsize
                  + tn * 4 + tm * tn * out_itemsize)
        if with_acc:
            ws += tm * tn * 4
        return ws

    # Batch tile: multiple of 16 (bf16 sublane packing); no full-extent
    # fallback -- B gets padded up to a multiple of tm instead.
    tm = min(tm_cap, _round_up(max(B, 1), 16))
    gB = _cdiv(B, tm)
    tm = min(tm_cap, _round_up(_cdiv(B, gB), 16))

    tm_cands = []
    t = tm
    while True:
        tm_cands.append(t)
        if t <= 16:
            break
        t = max(16, _round_up(t // 2, 16))

    tn_cands = [N_pad] + [c for c in (2048, 1024, 512, 256, 128)
                          if c < N_pad and N_pad % c == 0]
    tk_cands = [H] + [c for c in (4096, 2048, 1024, 512)
                      if c < H and H % c == 0]

    choice = None
    for tk in tk_cands:            # last resort: split the reduction dim (H)
        for tn in tn_cands:        # then: split the fused-N dim
            for tmc in tm_cands:   # first: shrink the batch tile (keeps
                #                    the weight slab VMEM-resident)
                if ws_bytes(tmc, tk, tn, tk < H) <= budget:
                    choice = (tmc, tk, tn)
                    break
            if choice:
                break
        if choice:
            break
    if choice is None:             # pathological shapes: smallest tiles
        choice = (16, tk_cands[-1], tn_cands[-1])
    tm, tk, tn = choice

    gB = _cdiv(B, tm)
    B_pad = gB * tm
    gN = N_pad // tn
    gK = H // tk

    # Megacore: never leave a (1, 1) parallel grid when there is enough work
    # (v7x has 2 TensorCores; harmless on single-TC v5e/v6e).
    if gB * gN == 1:
        if B_pad >= 32:
            tm = B_pad // 2        # B_pad is a multiple of 16 -> tm % 8 == 0
            gB = 2
        elif N_pad >= 256 and (N_pad // 2) % 128 == 0:
            tn = N_pad // 2
            gN = 2

    return tm, tk, tn, gB, gN, gK, B_pad, ws_bytes(tm, tk, tn, gK > 1)


# ----------------------------------------------------------------------------
# Forward (per-call path: only x moves; weights were prepared once)
# ----------------------------------------------------------------------------
def ensemble_fused_forward(x, w_fused, b_fused, n_out=None, *,
                           compute_dtype=jnp.bfloat16, out_dtype=None):
    """x: (B, H); w_fused: (H, N_pad); b_fused: (1, N_pad) -> (B, n_out).

    Equivalent to torch.cat([x @ W_m + b_m for m in models], dim=1).
    """
    B, H = x.shape
    H2, N_pad = w_fused.shape
    assert H == H2, (H, H2)
    assert N_pad % 128 == 0, N_pad
    n_out = N_pad if n_out is None else n_out
    out_dtype = x.dtype if out_dtype is None else out_dtype

    xb = jnp.dtype(x.dtype).itemsize
    wb = jnp.dtype(w_fused.dtype).itemsize
    ob = jnp.dtype(out_dtype).itemsize
    vmem_cap = _vmem_capacity_bytes()

    tm, tk, tn, gB, gN, gK, B_pad, ws = _plan_tiles(
        B, H, N_pad, xb, wb, ob, vmem_cap)

    x_in = x if B_pad == B else jnp.pad(x, ((0, B_pad - B), (0, 0)))

    # HBM traffic for the chosen grid order (Pallas only re-DMAs a block when
    # its index changes between consecutive grid steps).
    if gK == 1:
        batch_outer_bytes = gB * H * N_pad * wb + B_pad * H * xb
        n_outer_bytes = H * N_pad * wb + gN * B_pad * H * xb
        batch_outer = batch_outer_bytes <= n_outer_bytes
        stream_bytes = min(batch_outer_bytes, n_outer_bytes)
    else:
        batch_outer = True
        stream_bytes = gB * H * N_pad * wb + gN * B_pad * H * xb
    bytes_accessed = int(stream_bytes + N_pad * 4 + B_pad * N_pad * ob)

    cost = pl.CostEstimate(flops=2 * B_pad * H * N_pad, transcendentals=0,
                           bytes_accessed=bytes_accessed)

    if gK == 1:
        kernel = functools.partial(_fused_kernel, compute_dtype=compute_dtype)
        scratch_shapes = ()
        if batch_outer:
            grid = (gB, gN)
            in_specs = [
                pl.BlockSpec((tm, H), lambda i, j: (i, 0)),   # x batch tile
                pl.BlockSpec((H, tn), lambda i, j: (0, j)),   # fused weights
                pl.BlockSpec((1, tn), lambda i, j: (0, j)),   # fused bias
            ]
            out_spec = pl.BlockSpec((tm, tn), lambda i, j: (i, j))
        else:
            grid = (gN, gB)
            in_specs = [
                pl.BlockSpec((tm, H), lambda j, i: (i, 0)),
                pl.BlockSpec((H, tn), lambda j, i: (0, j)),
                pl.BlockSpec((1, tn), lambda j, i: (0, j)),
            ]
            out_spec = pl.BlockSpec((tm, tn), lambda j, i: (i, j))
        dim_sem = ("parallel", "parallel")
    else:
        kernel = functools.partial(_fused_kernel_acc, compute_dtype=compute_dtype)
        scratch_shapes = (pltpu.VMEM((tm, tn), jnp.float32),)
        grid = (gB, gN, gK)
        in_specs = [
            pl.BlockSpec((tm, tk), lambda i, j, k: (i, k)),
            pl.BlockSpec((tk, tn), lambda i, j, k: (k, j)),
            pl.BlockSpec((1, tn), lambda i, j, k: (0, j)),
        ]
        out_spec = pl.BlockSpec((tm, tn), lambda i, j, k: (i, j))
        dim_sem = ("parallel", "parallel", "arbitrary")

    vmem_limit = int(min(vmem_cap * 0.95,
                         max(int(ws * 1.5) + 4 * _MiB, 32 * _MiB)))

    out = pl.pallas_call(
        kernel,
        out_shape=jax.ShapeDtypeStruct((B_pad, N_pad), out_dtype),
        grid=grid,
        in_specs=in_specs,
        out_specs=out_spec,
        scratch_shapes=scratch_shapes,
        compiler_params=pltpu.CompilerParams(
            dimension_semantics=dim_sem,
            vmem_limit_bytes=vmem_limit,
        ),
        cost_estimate=cost,
    )(x_in, w_fused, b_fused)

    # Slice away batch / fused-N padding.  (If the consumer tolerates the
    # padded (B_pad, N_pad) slab, skipping this slice saves one XLA copy.)
    if B_pad != B or N_pad != n_out:
        out = out[:B, :n_out]
    return out


def ensemble_forward(x, stacked_w, stacked_b, *,
                     compute_dtype=jnp.bfloat16, out_dtype=None):
    """One-shot convenience path.  For repeated inference, call
    prepare_ensemble_params ONCE and reuse its outputs with
    ensemble_fused_forward (the weight fusion/cast is the per-call cost to
    avoid)."""
    w_fused, b_fused, n_out = prepare_ensemble_params(
        stacked_w, stacked_b, compute_dtype=compute_dtype)
    return ensemble_fused_forward(x, w_fused, b_fused, n_out,
                                  compute_dtype=compute_dtype,
                                  out_dtype=out_dtype)


if __name__ == "__main__":
    key = jax.random.PRNGKey(0)
    B, H, D, K = 8, 32, 128, 3   # batch, hidden, per-member out dim, #members

    kx, kw, kb = jax.random.split(key, 3)
    x = jax.random.normal(kx, (B, H), dtype=jnp.float32)
    # Deterministic per-submodel Linear parameters.
    stacked_w = jax.random.normal(kw, (K, H, D), dtype=jnp.float32) * 0.05
    stacked_b = jax.random.normal(kb, (K, D), dtype=jnp.float32) * 0.01

    # One-time weight prep, hoisted out of the per-call path.
    w_fused, b_fused, n_out = prepare_ensemble_params(stacked_w, stacked_b)
    w_fused = jax.block_until_ready(w_fused)
    b_fused = jax.block_until_ready(b_fused)

    fwd = jax.jit(lambda xx: ensemble_fused_forward(xx, w_fused, b_fused, n_out))
    out = jax.block_until_ready(fwd(x))
    assert out.shape == (B, K * D), out.shape

    # Reference at the kernel's precision (bf16 operands, f32 accumulation).
    xr = x.astype(jnp.bfloat16).astype(jnp.float32)
    wr = stacked_w.astype(jnp.bfloat16).astype(jnp.float32)
    ref_bf16 = jnp.concatenate(
        [xr @ wr[m] + stacked_b[m] for m in range(K)], axis=1)
    # Full-precision reference of the original module forward (loose check).
    ref_f32 = jnp.concatenate(
        [x @ stacked_w[m] + stacked_b[m] for m in range(K)], axis=1)

    assert jnp.allclose(out, ref_bf16, atol=1e-4, rtol=1e-4), \
        "mismatch vs matched-precision reference"
    assert jnp.allclose(out, ref_f32, atol=3e-2, rtol=3e-2), \
        "mismatch vs f32 reference"
    print("KERNEL_OK")
</pallas_src>

<mosaic_0001>
module attributes {stable_mosaic.version = 11 : i64} {
  func.func @_fused_kernel(%arg0: i32, %arg1: i32, %arg2: memref<16x32xf32, #tpu.memory_space<vmem>>, %arg3: memref<32x384xbf16, #tpu.memory_space<vmem>>, %arg4: memref<1x384xf32, #tpu.memory_space<vmem>>, %arg5: memref<16x384xf32, #tpu.memory_space<vmem>>) attributes {dimension_semantics = [#tpu.dimension_semantics<parallel>, #tpu.dimension_semantics<parallel>], iteration_bounds = array<i64: 1, 1>, scalar_prefetch = 0 : i64, scratch_operands = 0 : i64, tpu.core_type = #tpu.core_type<tc>, window_params = [{transform_indices = @transform_0, window_bounds = array<i64: 16, 32>}, {transform_indices = @transform_1, window_bounds = array<i64: 32, 384>}, {transform_indices = @transform_2, window_bounds = array<i64: 1, 384>}, {transform_indices = @transform_3, window_bounds = array<i64: 16, 384>}]} {
    %c0 = arith.constant 0 : index
    %c0_0 = arith.constant 0 : index
    %0 = vector.load %arg2[%c0, %c0_0] : memref<16x32xf32, #tpu.memory_space<vmem>>, vector<16x32xf32>
    %1 = arith.truncf %0 : vector<16x32xf32> to vector<16x32xbf16>
    %c0_1 = arith.constant 0 : index
    %c0_2 = arith.constant 0 : index
    %2 = vector.load %arg3[%c0_1, %c0_2] : memref<32x384xbf16, #tpu.memory_space<vmem>>, vector<32x384xbf16>
    %cst = arith.constant dense<0.000000e+00> : vector<16x384xf32>
    %3 = tpu.matmul %1, %2, %cst {dimension_numbers = #tpu.dot_dimension_numbers<[1], [0], [0], [1], [0, 0, 1, 1], [], []>} : vector<16x32xbf16>, vector<32x384xbf16>, vector<16x384xf32> -> vector<16x384xf32>
    %c0_3 = arith.constant 0 : index
    %c0_4 = arith.constant 0 : index
    %4 = vector.load %arg4[%c0_3, %c0_4] : memref<1x384xf32, #tpu.memory_space<vmem>>, vector<1x384xf32>
    %5 = vector.broadcast %4 : vector<1x384xf32> to vector<16x384xf32>
    %6 = arith.addf %3, %5 : vector<16x384xf32>
    %c0_5 = arith.constant 0 : index
    %c0_6 = arith.constant 0 : index
    %7 = vector.load %arg5[%c0_5, %c0_6] : memref<16x384xf32, #tpu.memory_space<vmem>>, vector<16x384xf32>
    tpu.vector_store %arg5[%c0_5, %c0_6], %6 {strides = array<i32>} : memref<16x384xf32, #tpu.memory_space<vmem>>, vector<16x384xf32>,
    return
  }
  func.func @transform_0(%arg0: i32, %arg1: i32) -> (i32, i32) {
    %c0_i32 = arith.constant 0 : i32
    %c0_i32_0 = arith.constant 0 : i32
    return %arg0, %c0_i32 : i32, i32
  }
  func.func @transform_1(%arg0: i32, %arg1: i32) -> (i32, i32) {
    %c0_i32 = arith.constant 0 : i32
    %c0_i32_0 = arith.constant 0 : i32
    return %c0_i32, %arg1 : i32, i32
  }
  func.func @transform_2(%arg0: i32, %arg1: i32) -> (i32, i32) {
    %c0_i32 = arith.constant 0 : i32
    %c0_i32_0 = arith.constant 0 : i32
    return %c0_i32, %arg1 : i32, i32
  }
  func.func @transform_3(%arg0: i32, %arg1: i32) -> (i32, i32) {
    %c0_i32 = arith.constant 0 : i32
    return %arg0, %arg1 : i32, i32
  }
}

</mosaic_0001>

<bundles_post_ra>
// kernel: _lambda_.1
= control target key start
LH: loop header
LB: loop body
LE: loop exit
PB: predicated region body
PF: predicated region fallthrough
CT: control target
= control target key end

     0   :  { %v203_v0 = vmov 0.0   ;;  %vm204_vm0 = vmmov 0   ;;  %v205_v3 = vmov 0   ;;  %vm75_vm1 = vcmask 261120   ;;  %s271_s1 = inlined_call_operand.vmem [shape: bf16[32,384], index: 1, kind: input, shape index: {}]   ;;  %s272_s0 = inlined_call_operand.vmem [shape: f32[16,32], index: 0, kind: input, shape index: {}]   ;;  %s273_s2 = inlined_call_operand.vmem [shape: f32[1,384], index: 2, kind: input, shape index: {}]   ;;  %s274_s3 = inlined_call_operand.vmem [shape: f32[16,384], index: 3, kind: output, shape index: {}]  }
   0x1   :  { %184 = vmatprep.subr.bf16.mxu1 %v203_v0  ;;  %v195_v1 = vld [vmem:[%s271_s1 + $0x4] ss:$12 sps:$4 sm:$0xff]   ;;  %188 = vmatprep.mubr.msk.bf16.mxu1 %vm204_vm0, %v203_v0  ;;  %v197_v2 = vld [vmem:[%s271_s1 + $0x8] ss:$12 sps:$4 sm:$0xff]   ;;  %v198_v4 = vld [vmem:[%s271_s1] ss:$12 sps:$4 sm:$0xff]   ;;  %v28_v11 = vlaneseq }
   0x2   :  { %111 = vmatprep.mubr.bf16.mxu0 %v205_v3  ;;  %79 = vmatprep.subr.bf16.mxu0 %v195_v1  ;;  %v199_v5 = vld [vmem:[%s271_s1 + $0x1c] ss:$12 sps:$4 sm:$0xff]   ;;  %v201_v6 = vld [vmem:[%s271_s1 + $0x20] ss:$12 sps:$4 sm:$0xff]   ;;  %v202_v7 = vld [vmem:[%s271_s1 + $0x18] ss:$12 sps:$4 sm:$0xff]  }
   0x3   :  { %185 = vmatpush3.bf16.msra.mxu1 %v197_v2  ;;  %80 = vmatpush1.bf16.msra.mxu0 %v198_v4  ;;  %v15_v8 = vld [vmem:[%s272_s0] sm:$0xff]  ;;  %v16_v9 = vld [vmem:[%s272_s0 + $0x8] sm:$0xff]  ;;  %v29_v12 = vshrl.u32 %v28_v11, 7 }
   0x4   :  { %186 = vmatprep.subr.bf16.mxu1 %v203_v0  ;;  %81 = vmatprep.subr.bf16.mxu0 %v199_v5  ;;  %v17_v10 = vpack.c.bf16 %v16_v9, %v15_v8  ;;  %v26_v14 = vld [vmem:[%s273_s2] sm:$0x7] }
   0x5   :  { %v38_v13 = vsub.s32 2, %v29_v12  ;;  %v30_v15 = vsub.s32 0, %v29_v12  ;;  %v34_v16 = vsub.s32 1, %v29_v12 }
   0x7   :  { %187 = vmatpush3.bf16.msra.mxu1 %v201_v6  ;;  %82 = vmatpush1.bf16.msra.mxu0 %v202_v7  ;;  %v39_v17 = vrot.slane %v26_v14, %v38_v13  ;;  %v31_v18 = vrot.slane %v26_v14, %v30_v15  ;;  %v35_v19 = vrot.slane %v26_v14, %v34_v16 }
   0xa   :  { %189 = vmatmul.mubr.msk.bf16.vlgmr.msra.gmra.mrb[0].mxu1 %vm75_vm1, %v17_v10  ;;  %179 = vmatmul.mubr.msk.bf16.vlgmr.msra.gmra.mrb[0].mxu0 %vm75_vm1, %v17_v10 }
  0xdd   :  { %v156_v20 = vpop.f32.mrb[0].mxu1  ;;  %v113_v22 = vpop.f32.mrb[0].mxu0 }
  0xde   :  { %v157_v21 = vadd.f32 %v156_v20, %v39_v17  ;;  %v190_v23 = vpop.f32.mrb[1].mxu1  ;;  %v114_v24 = vadd.f32 %v113_v22, %v31_v18  ;;  %v115_v25 = vpop.f32.mrb[1].mxu0 }
  0xdf   :  { %v159_v26 = vpop.f32.mrb[2].mxu1  ;;  %v116_v27 = vadd.f32 %v115_v25, %v35_v19  ;;  %v117_v29 = vpop.f32.mrb[2].mxu0 }
  0xe0   :  { %165 = vst [vmem:[%s274_s3 + $0x10] sm:$0xff] %v157_v21  ;;  %v160_v28 = vadd.f32 %v159_v26, %v39_v17  ;;  %v191_v30 = vpop.f32.mrb[3].mxu1  ;;  %163 = vst [vmem:[%s274_s3] sm:$0xff] %v114_v24  ;;  %v118_v31 = vadd.f32 %v117_v29, %v31_v18  ;;  %v119_v32 = vpop.f32.mrb[3].mxu0 }
  0xe1   :  { %164 = vst [vmem:[%s274_s3 + $0x8] sm:$0xff] %v116_v27  ;;  %v120_v33 = vadd.f32 %v119_v32, %v35_v19 }
  0xe2   :  { %168 = vst [vmem:[%s274_s3 + $0x28] sm:$0xff] %v160_v28  ;;  %166 = vst [vmem:[%s274_s3 + $0x18] sm:$0xff] %v118_v31 }
  0xe3   :  { %167 = vst [vmem:[%s274_s3 + $0x20] sm:$0xff] %v120_v33 }

</bundles_post_ra>
